<compile_context>
chip_gen: v7x
topology: tpu7x:2x2x1
jax: 0.10.0
libtpu: 0.0.40
codegen_flags: <defaults>
</compile_context>

<pallas_src>
import functools

import jax
import jax.numpy as jnp
from jax.experimental import pallas as pl
from jax.experimental.pallas import tpu as pltpu


_LANE = 128
_VMEM_BUDGET_BYTES = 40 * 1024 * 1024   # tile-sizing budget (fits v7x 64 MiB/TC)
_VMEM_LIMIT_BYTES = 48 * 1024 * 1024    # scoped VMEM limit handed to Mosaic


def _round_up(x: int, m: int) -> int:
    return ((x + m - 1) // m) * m


def _sublane_granularity(dtype) -> int:
    # Packed sublane granularity: 8 rows for 32-bit, 16 for 16-bit, 32 for 8-bit.
    itemsize = jnp.dtype(dtype).itemsize
    return {4: 8, 2: 16, 1: 32}.get(itemsize, 8)


def _pick_tile_m(n: int, c: int, dtype, requested) -> int:
    """Choose a batch-tile size that fits VMEM and keeps >=2 grid steps."""
    gran = _sublane_granularity(dtype)
    itemsize = jnp.dtype(dtype).itemsize
    c_pad = _round_up(c, _LANE)  # VMEM lane padding (C=32 -> 128, a 4x factor)
    # Per tile-row VMEM bytes: 2 inputs x 2 pipeline buffers (lane padded)
    # plus ~6 live f32 (tile_m, c_pad) temporaries inside the kernel body.
    bytes_per_row = 2 * 2 * c_pad * itemsize + 6 * c_pad * 4
    budget_tile = max(gran, (_VMEM_BUDGET_BYTES // bytes_per_row) // gran * gran)
    tile = budget_tile if requested is None else min(int(requested), budget_tile)
    # Keep at least two grid steps when the batch allows, so v7x's two
    # TensorCores (megacore split of the "parallel" axis) both get work.
    if n >= 2 * gran:
        tile = min(tile, _round_up((n + 1) // 2, gran))
    tile = max(gran, min(_round_up(tile, gran), _round_up(n, gran)))
    return tile


# -----------------------------------------------------------------------------
# Pallas kernel: per-tile partial sum of soft-label cross entropy.
# -----------------------------------------------------------------------------
def _hl_gauss_ce_kernel(logits_ref, target_ref, partial_ref, *, tile_m, n_rows):
    logits = logits_ref[...].astype(jnp.float32)              # (TM, C)
    target = target_ref[...].astype(jnp.float32)              # (TM, C)

    # Numerically-stable log-sum-exp per row.
    m = jnp.max(logits, axis=-1, keepdims=True)                # (TM, 1)
    lse = jnp.log(jnp.sum(jnp.exp(logits - m), axis=-1, keepdims=True)) + m

    # Folded cross entropy: -sum(t * log_softmax(x)) = sum(t)*lse - sum(t*x).
    t_sum = jnp.sum(target, axis=-1, keepdims=True)            # (TM, 1)
    t_dot = jnp.sum(target * logits, axis=-1, keepdims=True)   # (TM, 1)
    per_row = t_sum * lse - t_dot                               # (TM, 1)

    # Mask tail rows of the (possibly ragged) last tile.  This select must stay
    # BEFORE the batch-sum below: padded rows hold unspecified data.
    i = pl.program_id(0)
    row_ids = i * tile_m + jax.lax.broadcasted_iota(jnp.int32, (tile_m, 1), 0)
    per_row = jnp.where(row_ids < n_rows, per_row, 0.0)

    # One lane-dense (8, 128) partial-sum block per grid step (unmasked vst).
    tile_sum = jnp.sum(per_row)
    partial_ref[...] = jnp.full(partial_ref.shape, tile_sum, dtype=jnp.float32)


def hl_gauss_cross_entropy(logits: jax.Array, target: jax.Array,
                           *, tile_m: int | None = None) -> jax.Array:
    """Equivalent of HLGaussLoss.forward: F.cross_entropy(logits, target)
    with soft probability targets, mean reduction over the batch.

    Fast path: pass bf16 logits/target (halves HBM traffic on the
    bandwidth-bound v5e/v6e); all in-kernel math is f32.
    """
    assert logits.shape == target.shape and logits.ndim == 2
    n, c = logits.shape
    tile = _pick_tile_m(n, c, logits.dtype, tile_m)
    num_tiles = pl.cdiv(n, tile)

    kernel = functools.partial(_hl_gauss_ce_kernel, tile_m=tile, n_rows=n)

    partials = pl.pallas_call(
        kernel,
        out_shape=jax.ShapeDtypeStruct((num_tiles, 8, 128), jnp.float32),
        grid=(num_tiles,),
        in_specs=[
            pl.BlockSpec((tile, c), lambda i: (i, 0)),
            pl.BlockSpec((tile, c), lambda i: (i, 0)),
        ],
        out_specs=pl.BlockSpec((1, 8, 128), lambda i: (i, 0, 0)),
        compiler_params=pltpu.CompilerParams(
            dimension_semantics=("parallel",),
            vmem_limit_bytes=_VMEM_LIMIT_BYTES),
    )(logits, target)

    # Tiny final reduction (num_tiles scalars) + precomputed 1/N, done in XLA.
    return jnp.sum(partials[:, 0, 0]) * (1.0 / n)


# -----------------------------------------------------------------------------
# Plain-JAX glue mirroring HLGaussLoss.__init__ / transform_to_probs
# (only used here to build deterministic soft targets for the kernel).
# -----------------------------------------------------------------------------
def make_support(min_value: float, max_value: float, num_bins: int) -> jax.Array:
    return jnp.linspace(min_value, max_value, num_bins + 1, dtype=jnp.float32)


def transform_to_probs(target_scalar: jax.Array, support: jax.Array,
                       sigma: float) -> jax.Array:
    cdf = jax.lax.erf(
        (support - target_scalar[..., None]) / (jnp.sqrt(2.0) * sigma))
    z = cdf[..., -1] - cdf[..., 0]
    bin_probs = cdf[..., 1:] - cdf[..., :-1]
    return bin_probs / z[..., None]


# -----------------------------------------------------------------------------
# Pure-JAX reference for correctness checks.
# -----------------------------------------------------------------------------
def _reference_cross_entropy(logits, target):
    logits = logits.astype(jnp.float32)
    target = target.astype(jnp.float32)
    log_probs = jax.nn.log_softmax(logits, axis=-1)
    return jnp.mean(-jnp.sum(target * log_probs, axis=-1))


if __name__ == "__main__":
    # HLGaussLoss(min_value=-1.0, max_value=1.0, num_bins=32, sigma=0.1)
    min_value, max_value, num_bins, sigma = -1.0, 1.0, 32, 0.1
    support = make_support(min_value, max_value, num_bins)

    batch = 300  # not a multiple of the tile -> exercises tail masking
    key = jax.random.PRNGKey(0)
    k_logits, k_target = jax.random.split(key)

    logits = jax.random.normal(k_logits, (batch, num_bins), dtype=jnp.float32)
    scalar_targets = jax.random.uniform(
        k_target, (batch,), minval=min_value, maxval=max_value,
        dtype=jnp.float32)
    target_probs = transform_to_probs(scalar_targets, support, sigma)

    ref = _reference_cross_entropy(logits, target_probs)

    # 1) f32, small explicit tile -> 3-tile grid with a ragged last tile.
    loss = jax.block_until_ready(
        hl_gauss_cross_entropy(logits, target_probs, tile_m=128))
    assert jnp.allclose(loss, ref, rtol=2e-5, atol=2e-5), (loss, ref)

    # 2) f32, auto tile (VMEM-budgeted, >=2 grid steps for megacore).
    loss_d = jax.block_until_ready(
        hl_gauss_cross_entropy(logits, target_probs))
    assert jnp.allclose(loss_d, ref, rtol=2e-5, atol=2e-5), (loss_d, ref)

    # 3) bf16 HBM inputs (bandwidth fast path), f32 in-kernel math, 16-row
    #    sublane granularity for the packed layout.
    logits_bf = logits.astype(jnp.bfloat16)
    target_bf = target_probs.astype(jnp.bfloat16)
    loss_bf = jax.block_until_ready(
        hl_gauss_cross_entropy(logits_bf, target_bf))
    ref_bf = _reference_cross_entropy(logits_bf, target_bf)
    assert jnp.allclose(loss_bf, ref_bf, rtol=1e-4, atol=1e-4), (loss_bf, ref_bf)

    print("KERNEL_OK")
</pallas_src>

<mosaic_0001>
module attributes {stable_mosaic.version = 11 : i64} {
  func.func @_hl_gauss_ce_kernel(%arg0: i32, %arg1: memref<128x32xf32, #tpu.memory_space<vmem>>, %arg2: memref<128x32xf32, #tpu.memory_space<vmem>>, %arg3: memref<1x8x128xf32, #tpu.memory_space<vmem>>) attributes {dimension_semantics = [#tpu.dimension_semantics<parallel>], iteration_bounds = array<i64: 3>, scalar_prefetch = 0 : i64, scratch_operands = 0 : i64, tpu.core_type = #tpu.core_type<tc>, window_params = [{transform_indices = @transform_0, window_bounds = array<i64: 128, 32>}, {transform_indices = @transform_1, window_bounds = array<i64: 128, 32>}, {transform_indices = @transform_2, window_bounds = array<i64: 1, 8, 128>}]} {
    %c0 = arith.constant 0 : index
    %c0_0 = arith.constant 0 : index
    %0 = vector.load %arg1[%c0, %c0_0] : memref<128x32xf32, #tpu.memory_space<vmem>>, vector<128x32xf32>
    %c0_1 = arith.constant 0 : index
    %c0_2 = arith.constant 0 : index
    %1 = vector.load %arg2[%c0_1, %c0_2] : memref<128x32xf32, #tpu.memory_space<vmem>>, vector<128x32xf32>
    %cst = arith.constant dense<0xFF800000> : vector<128xf32>
    %2 = vector.multi_reduction <maximumf>, %0, %cst [1] : vector<128x32xf32> to vector<128xf32>
    %3 = vector.shape_cast %2 : vector<128xf32> to vector<128x1xf32>
    %4 = vector.broadcast %3 : vector<128x1xf32> to vector<128x32xf32>
    %5 = arith.subf %0, %4 : vector<128x32xf32>
    %6 = math.exp %5 : vector<128x32xf32>
    %cst_3 = arith.constant dense<0.000000e+00> : vector<128xf32>
    %7 = vector.multi_reduction <add>, %6, %cst_3 [1] : vector<128x32xf32> to vector<128xf32>
    %8 = vector.shape_cast %7 : vector<128xf32> to vector<128x1xf32>
    %9 = math.log %8 : vector<128x1xf32>
    %10 = arith.addf %9, %3 : vector<128x1xf32>
    %cst_4 = arith.constant dense<0.000000e+00> : vector<128xf32>
    %11 = vector.multi_reduction <add>, %1, %cst_4 [1] : vector<128x32xf32> to vector<128xf32>
    %12 = vector.shape_cast %11 : vector<128xf32> to vector<128x1xf32>
    %13 = arith.mulf %1, %0 : vector<128x32xf32>
    %cst_5 = arith.constant dense<0.000000e+00> : vector<128xf32>
    %14 = vector.multi_reduction <add>, %13, %cst_5 [1] : vector<128x32xf32> to vector<128xf32>
    %15 = vector.shape_cast %14 : vector<128xf32> to vector<128x1xf32>
    %16 = arith.mulf %12, %10 : vector<128x1xf32>
    %17 = arith.subf %16, %15 : vector<128x1xf32>
    %c128_i32 = arith.constant 128 : i32
    %18 = arith.muli %arg0, %c128_i32 : i32
    %19 = tpu.iota {dimensions = array<i32: 0>} : vector<128x1xi32>
    %20 = vector.broadcast %18 : i32 to vector<128x1xi32>
    %21 = arith.addi %20, %19 : vector<128x1xi32>
    %c300_i32 = arith.constant 300 : i32
    %22 = vector.broadcast %c300_i32 : i32 to vector<128x1xi32>
    %23 = arith.cmpi slt, %21, %22 : vector<128x1xi32>
    %cst_6 = arith.constant 0.000000e+00 : f32
    %24 = vector.broadcast %cst_6 : f32 to vector<128x1xf32>
    %25 = arith.select %23, %17, %24 : vector<128x1xi1>, vector<128x1xf32>
    %26 = vector.shape_cast %25 : vector<128x1xf32> to vector<1x128x1xf32>
    %cst_7 = arith.constant dense<0.000000e+00> : vector<1xf32>
    %27 = vector.multi_reduction <add>, %26, %cst_7 [1, 2] : vector<1x128x1xf32> to vector<1xf32>
    %28 = vector.shape_cast %27 : vector<1xf32> to vector<1x1x1xf32>
    %29 = vector.extract %28[0, 0, 0] : f32 from vector<1x1x1xf32>
    %30 = vector.broadcast %29 : f32 to vector<1x8x128xf32>
    %c0_8 = arith.constant 0 : index
    %c0_9 = arith.constant 0 : index
    %c0_10 = arith.constant 0 : index
    %31 = vector.load %arg3[%c0_8, %c0_9, %c0_10] : memref<1x8x128xf32, #tpu.memory_space<vmem>>, vector<1x8x128xf32>
    tpu.vector_store %arg3[%c0_8, %c0_9, %c0_10], %30 {strides = array<i32>} : memref<1x8x128xf32, #tpu.memory_space<vmem>>, vector<1x8x128xf32>,
    return
  }
  func.func @transform_0(%arg0: i32) -> (i32, i32) {
    %c0_i32 = arith.constant 0 : i32
    %c0_i32_0 = arith.constant 0 : i32
    return %arg0, %c0_i32 : i32, i32
  }
  func.func @transform_1(%arg0: i32) -> (i32, i32) {
    %c0_i32 = arith.constant 0 : i32
    %c0_i32_0 = arith.constant 0 : i32
    return %arg0, %c0_i32 : i32, i32
  }
  func.func @transform_2(%arg0: i32) -> (i32, i32, i32) {
    %c0_i32 = arith.constant 0 : i32
    %c0_i32_0 = arith.constant 0 : i32
    %c0_i32_1 = arith.constant 0 : i32
    return %arg0, %c0_i32, %c0_i32_0 : i32, i32, i32
  }
}

</mosaic_0001>

<bundles_post_ra>
// kernel: tpu_custom_call.1
= control target key start
LH: loop header
LB: loop body
LE: loop exit
PB: predicated region body
PF: predicated region fallthrough
CT: control target
= control target key end

     0   :  { %7 = vsyncpa [#allocation3], 0  ;;  %s1479_s0 = inlined_call_operand.vmem [shape: f32[300,32], index: 0, kind: input, shape index: {}]   ;;  %s1480_s1 = inlined_call_operand.vmem [shape: f32[300,32], index: 1, kind: input, shape index: {}]   ;;  %s1481_s2 = inlined_call_operand.hbm [shape: f32[3,8,128], index: 2, kind: output, shape index: {}]  }
   0x1   :  { %9 = vsyncpa [#allocation3 + $0x1], 0  ;;  %s969_s9 = smov 0   ;;  %s971_s10 = smov 0  }
   0x2   :  { %s973_s11 = smov 0   ;;  %s975_s12 = smov 0  }
   0x3 LB: > { %s990_s13 = sadd.s32 4294967295, %s951_s12   ;;  %s770_s14 = sadd.s32 4294967294, %s951_s12   ;;  %s951_s12 = sphi %s975_s12, %s1487_s12   ;;  %s947_s11 = sphi %s973_s11, %s1486_s11   ;;  %s943_s10 = sphi %s971_s10, %s1485_s10   ;;  %s939_s9 = sphi %s969_s9, %s1484_s9  }
   0x4   : > { %s994_s15 = sadd.s32 1, %s951_s12   ;;  %s74_s16 = sadd.s32 1, %s947_s11 }
   0x5   : > { %s71_s17 = ssub.s32 %s951_s12, %s994_s15  ;;  %p84_p0 = scmp.ne.s32.totalorder %s947_s11, %s943_s10 }
   0x6   : > { %p72_p1 = scmp.eq.s32.totalorder %s71_s17, 0  ;;  %p85_p2 = scmp.eq.s32.totalorder %s990_s13, 2 }
   0x7   : > { %p90_p3 = scmp.ne.s32.totalorder %s943_s10, %s939_s9  ;;  %p91_p4 = scmp.eq.s32.totalorder %s770_s14, 2 }
   0x8   : > { %s1005_s18 = scalar_select %p72_p1, %s947_s11, %s74_s16  }
   0x9   : > { %p1007_p5 = por %p85_p2, %p84_p0  ;;  %p1011_p6 = por %p91_p4, %p90_p3 }
   0xa   : > { %p773_p7 = scmp.ge.s32.totalorder %s951_s12, 1  ;;  %p143_p8 = scmp.lt.s32.totalorder %s951_s12, 4 }
   0xc   : > { %p144_p9 = pnand %p773_p7, %p143_p8 }
   0xd   : > { %s775_s21 = sshll.u32 (!%p144_p9), %s990_s13, 4  ;;  %vm238_vm0 = vcmask (!%p144_p9), 261120   ;;  %s779_s29 = sshll.u32 (!%p144_p9), %s990_s13, 7  ;;  %vm642_vm1 = vcmask (!%p144_p9), 7168  }
   0xe   : > { %147 = sbr.rel (%p144_p9) target bundleno = 607 (0x25f), region = 28  ;;  %p183_p10 = scmp.lt.s32.totalorder (!%p144_p9), %s775_s21, 37 }
   0xf   : > { %s175_s30 = sand.u32 (!%p144_p9), 1, %s943_s10   ;;  %s1439_s14 = scalar_lea.hbm (!%p144_p9), %s1481_s2, %s779_s29 }
  0x10   : > { %s774_s3 = sshll.u32 (!%p144_p9), %s175_s30, 3  ;;  %s686_s16 = scalar_lea.sflag (!%p144_p9), [#allocation3], %s175_s30 }
  0x11   : > { %s177_s4 = scalar_lea.vmem (!%p144_p9), [#allocation2], %s774_s3 }
  0x12   : > { %s699_s5 = sshll.u32 (!%p144_p9), %s177_s4, 4  ;;  %s1432_s5 = int_to_ptr.vmem [resolvable:$true] %s699_s5 }
  0x13   : > { %s889_s17 = scalar_lea.vmem (!%p144_p9), %s1432_s5, 128 }
  0x14   : > { %p890_p11 = scmp.ne.s32.totalorder (!%p144_p9), %s1432_s5, %s889_s17 }
  0x15   : > { %s1489_s21 = smov (!%p183_p10, %s775_s21), 37 }
  0x16   : > { %s776_s22 = sshll.u32 %s1489_s21, 3  ;;  %p891_p12 = pnand %p890_p11, %p1007_p5 }
  0x17   : > { %s1026_s25 = scalar_lea.vmem %s1479_s0, %s776_s22  ;;  %s1109_s28 = scalar_lea.vmem %s1480_s1, %s776_s22 }
  0x18   : > { %v1029_v0 = vld [vmem:[%s1026_s25] sm:$0xff]  ;;  %v1032_v1 = vld [vmem:[%s1026_s25 + $0x10] sm:$0xff]  ;;  %v1035_v2 = vld [vmem:[%s1026_s25 + $0x8] sm:$0xff]  ;;  %p892_p13 = pneg %p891_p12  ;;  %s953_s21 = smov [#allocation2]  }
  0x19   : > { %v239_v3 = vsel %vm238_vm0, %v1029_v0, -inf  ;;  %v245_v4 = vsel %vm238_vm0, %v1032_v1, -inf  ;;  %v1042_v5 = vld [vmem:[%s1026_s25 + $0x18] sm:$0xff]  ;;  %v242_v6 = vsel %vm238_vm0, %v1035_v2, -inf  ;;  %v1049_v8 = vld [vmem:[%s1026_s25 + $0x20] sm:$0xff]  ;;  %v1052_v9 = vld [vmem:[%s1026_s25 + $0x28] sm:$0xff] }
  0x1a   : > { %240 = vmax.xlane.f32.xlu0 %v239_v3  ;;  %246 = vmax.xlane.f32.xlu1 %v245_v4  ;;  %v248_v7 = vsel %vm238_vm0, %v1042_v5, -inf  ;;  %v251_v10 = vsel %vm238_vm0, %v1049_v8, -inf  ;;  %v254_v11 = vsel %vm238_vm0, %v1052_v9, -inf  ;;  %v1059_v12 = vld [vmem:[%s1026_s25 + $0x30] sm:$0xff]  ;;  %v1062_v13 = vld [vmem:[%s1026_s25 + $0x38] sm:$0xff]  ;;  %v1069_v16 = vld [vmem:[%s1026_s25 + $0x40] sm:$0xff] }
  0x1b   : > { %v257_v14 = vsel %vm238_vm0, %v1059_v12, -inf  ;;  %v260_v15 = vsel %vm238_vm0, %v1062_v13, -inf  ;;  %v1072_v17 = vld [vmem:[%s1026_s25 + $0x48] sm:$0xff]  ;;  %v263_v18 = vsel %vm238_vm0, %v1069_v16, -inf  ;;  %v1079_v20 = vld [vmem:[%s1026_s25 + $0x58] sm:$0xff]  ;;  %v1082_v21 = vld [vmem:[%s1026_s25 + $0x50] sm:$0xff] }
  0x1c   : > { %v266_v19 = vsel %vm238_vm0, %v1072_v17, -inf  ;;  %v272_v22 = vsel %vm238_vm0, %v1079_v20, -inf  ;;  %v269_v23 = vsel %vm238_vm0, %v1082_v21, -inf  ;;  %v1089_v24 = vld [vmem:[%s1026_s25 + $0x68] sm:$0xff]  ;;  %v1092_v25 = vld [vmem:[%s1026_s25 + $0x60] sm:$0xff]  ;;  %v1099_v28 = vld [vmem:[%s1026_s25 + $0x78] sm:$0xff] }
  0x1d   : > { %v278_v26 = vsel %vm238_vm0, %v1089_v24, -inf  ;;  %v275_v27 = vsel %vm238_vm0, %v1092_v25, -inf  ;;  %v1102_v29 = vld [vmem:[%s1026_s25 + $0x70] sm:$0xff]  ;;  %v284_v30 = vsel %vm238_vm0, %v1099_v28, -inf  ;;  %v223_v32 = vld [vmem:[%s1109_s28 + $0x8] sm:$0xff]  ;;  %v222_v33 = vld [vmem:[%s1109_s28] sm:$0xff] }
  0x1e   : > { %243 = vmax.xlane.f32.xlu0 %v242_v6  ;;  %249 = vmax.xlane.f32.xlu1 %v248_v7  ;;  %v281_v31 = vsel %vm238_vm0, %v1102_v29, -inf  ;;  %v434_v34 = vsel %vm238_vm0, %v223_v32, 0.0  ;;  %v431_v35 = vsel %vm238_vm0, %v222_v33, 0.0  ;;  %v479_v36 = vmul.f32 %v222_v33, %v1029_v0  ;;  %v224_v37 = vld [vmem:[%s1109_s28 + $0x10] sm:$0xff]  ;;  %v225_v44 = vld [vmem:[%s1109_s28 + $0x18] sm:$0xff]  ;;  %v226_v45 = vld [vmem:[%s1109_s28 + $0x20] sm:$0xff] }
  0x1f   : > { %v437_v38 = vsel %vm238_vm0, %v224_v37, 0.0  ;;  %v480_v40 = vmul.f32 %v223_v32, %v1035_v2  ;;  %v481_v41 = vmul.f32 %v224_v37, %v1032_v1  ;;  %v440_v46 = vsel %vm238_vm0, %v225_v44, 0.0  ;;  %v227_v52 = vld [vmem:[%s1109_s28 + $0x28] sm:$0xff]  ;;  %v228_v53 = vld [vmem:[%s1109_s28 + $0x30] sm:$0xff]  ;;  %v229_v60 = vld [vmem:[%s1109_s28 + $0x38] sm:$0xff]  ;;  %s893_s22 = sshll.u32 %s953_s21, 4  ;;  %s894_s22 = int_to_ptr.vmem [resolvable:$false] %s893_s22 }
  0x20   : > { %v495_v39 = vsel %vm238_vm0, %v479_v36, 0.0  ;;  %v443_v47 = vsel %vm238_vm0, %v226_v45, 0.0  ;;  %v482_v48 = vmul.f32 %v225_v44, %v1042_v5  ;;  %v483_v49 = vmul.f32 %v226_v45, %v1049_v8  ;;  %v230_v61 = vld [vmem:[%s1109_s28 + $0x40] sm:$0xff]  ;;  %v231_v4 = vld [vmem:[%s1109_s28 + $0x48] sm:$0xff]  ;;  %s895_s23 = scalar_lea.vmem %s894_s22, 256  ;;  %p896_p0 = scmp.lt.s32.totalorder %s1432_s5, %s894_s22 }
  0x21   : > { %v498_v42 = vsel %vm238_vm0, %v480_v40, 0.0  ;;  %v501_v43 = vsel %vm238_vm0, %v481_v41, 0.0  ;;  %v446_v54 = vsel %vm238_vm0, %v227_v52, 0.0  ;;  %v449_v55 = vsel %vm238_vm0, %v228_v53, 0.0  ;;  %p897_p1 = scmp.lt.s32.totalorder %s895_s23, %s889_s17 }
  0x22   : > { %252 = vmax.xlane.f32.xlu0 %v251_v10  ;;  %255 = vmax.xlane.f32.xlu1 %v254_v11  ;;  %v504_v50 = vsel %vm238_vm0, %v482_v48, 0.0  ;;  %v507_v51 = vsel %vm238_vm0, %v483_v49, 0.0  ;;  %v484_v56 = vmul.f32 %v227_v52, %v1052_v9  ;;  %v485_v57 = vmul.f32 %v228_v53, %v1059_v12  ;;  %v1153_v11 = vld [vmem:[%s1109_s28 + $0x50] sm:$0xff] }
  0x23   : > { %v452_v62 = vsel %vm238_vm0, %v229_v60, 0.0  ;;  %v455_v63 = vsel %vm238_vm0, %v230_v61, 0.0  ;;  %v486_v3 = vmul.f32 %v229_v60, %v1062_v13  ;;  %v458_v7 = vsel %vm238_vm0, %v231_v4, 0.0  ;;  %p898_p2 = por %p897_p1, %p896_p0 }
  0x24   : > { %v510_v58 = vsel %vm238_vm0, %v484_v56, 0.0  ;;  %v513_v59 = vsel %vm238_vm0, %v485_v57, 0.0  ;;  %v487_v10 = vmul.f32 %v230_v61, %v1069_v16 }
  0x25   : > { %v516_v6 = vsel %vm238_vm0, %v486_v3, 0.0  ;;  %p899_p3 = pnand %p898_p2, %p892_p13 }
  0x26   : > { %258 = vmax.xlane.f32.xlu0 %v257_v14  ;;  %261 = vmax.xlane.f32.xlu1 %v260_v15  ;;  %v519_v14 = vsel %vm238_vm0, %v487_v10, 0.0  ;;  %v461_v15 = vsel %vm238_vm0, %v1153_v11, 0.0 }
  0x2a   : > { %264 = vmax.xlane.f32.xlu0 %v263_v18  ;;  %267 = vmax.xlane.f32.xlu1 %v266_v19  ;;  %v488_v18 = vmul.f32 %v231_v4, %v1072_v17  ;;  %v1160_v19 = vld [vmem:[%s1109_s28 + $0x58] sm:$0xff] }
  0x2e   : > { %273 = vmax.xlane.f32.xlu1 %v272_v22  ;;  %270 = vmax.xlane.f32.xlu0 %v269_v23  ;;  %v522_v22 = vsel %vm238_vm0, %v488_v18, 0.0  ;;  %v464_v23 = vsel %vm238_vm0, %v1160_v19, 0.0 }
  0x32   : > { %279 = vmax.xlane.f32.xlu1 %v278_v26  ;;  %276 = vmax.xlane.f32.xlu0 %v275_v27 }
  0x36   : > { %285 = vmax.xlane.f32.xlu1 %v284_v30  ;;  %282 = vmax.xlane.f32.xlu0 %v281_v31 }
  0x3a   : > { %435 = vadd.xlane.f32.xlu0 %v434_v34  ;;  %432 = vadd.xlane.f32.xlu1 %v431_v35 }
  0x3e   : > { %438 = vadd.xlane.f32.xlu0 %v437_v38  ;;  %496 = vadd.xlane.f32.xlu1 %v495_v39 }
  0x42   : > { %499 = vadd.xlane.f32.xlu0 %v498_v42  ;;  %502 = vadd.xlane.f32.xlu1 %v501_v43 }
  0x46   : > { %441 = vadd.xlane.f32.xlu0 %v440_v46  ;;  %444 = vadd.xlane.f32.xlu1 %v443_v47 }
  0x4a   : > { %505 = vadd.xlane.f32.xlu0 %v504_v50  ;;  %508 = vadd.xlane.f32.xlu1 %v507_v51 }
  0x4e   : > { %447 = vadd.xlane.f32.xlu0 %v446_v54  ;;  %450 = vadd.xlane.f32.xlu1 %v449_v55 }
  0x52   : > { %511 = vadd.xlane.f32.xlu0 %v510_v58  ;;  %514 = vadd.xlane.f32.xlu1 %v513_v59 }
  0x56   : > { %453 = vadd.xlane.f32.xlu0 %v452_v62  ;;  %456 = vadd.xlane.f32.xlu1 %v455_v63 }
  0x5a   : > { %517 = vadd.xlane.f32.xlu0 %v516_v6  ;;  %459 = vadd.xlane.f32.xlu1 %v458_v7 }
  0x5e   : > { %520 = vadd.xlane.f32.xlu0 %v519_v14  ;;  %462 = vadd.xlane.f32.xlu1 %v461_v15 }
  0x62   : > { %523 = vadd.xlane.f32.xlu0 %v522_v22  ;;  %465 = vadd.xlane.f32.xlu1 %v464_v23 }
  0xa7   : > { %v1165_v26 = vpop.xlane.xlu0 %240  ;;  %v1167_v27 = vpop.xlane.xlu1 %246 }
  0xa8   : > { %v287_v30 = vsub.f32 %v1029_v0, %v1165_v26  ;;  %v289_v31 = vsub.f32 %v1032_v1, %v1167_v27 }
  0xaa   : > { %v303_v32 = vmul.f32 1.442695, %v287_v30  ;;  %v307_v33 = vmul.f32 1.442695, %v289_v31 }
  0xab   : > { %v1173_v34 = vpop.xlane.xlu0 %243  ;;  %v1175_v35 = vpop.xlane.xlu1 %249 }
  0xac   : > { %825 = vpow2.f32 %v303_v32  ;;  %v288_v36 = vsub.f32 %v1035_v2, %v1173_v34  ;;  %v290_v37 = vsub.f32 %v1042_v5, %v1175_v35 }
  0xad   : > { %827 = vpow2.f32 %v307_v33 }
  0xae   : > { %v305_v38 = vmul.f32 1.442695, %v288_v36  ;;  %v309_v39 = vmul.f32 1.442695, %v290_v37 }
  0xaf   : > { %v1181_v0 = vpop.xlane.xlu0 %252  ;;  %v1183_v40 = vpop.xlane.xlu1 %255 }
  0xb0   : > { %829 = vpow2.f32 %v305_v38  ;;  %v291_v1 = vsub.f32 %v1049_v8, %v1181_v0  ;;  %v292_v41 = vsub.f32 %v1052_v9, %v1183_v40  ;;  %v489_v38 = vmul.f32 %v1153_v11, %v1082_v21 }
  0xb1   : > { %831 = vpow2.f32 %v309_v39 }
  0xb2   : > { %v311_v42 = vmul.f32 1.442695, %v291_v1  ;;  %v313_v2 = vmul.f32 1.442695, %v292_v41 }
  0xb3   : > { %v1189_v43 = vpop.xlane.xlu0 %258  ;;  %v1191_v5 = vpop.xlane.xlu1 %261 }
  0xb4   : > { %833 = vpow2.f32 %v311_v42  ;;  %v293_v44 = vsub.f32 %v1059_v12, %v1189_v43  ;;  %v294_v45 = vsub.f32 %v1062_v13, %v1191_v5 }
  0xb5   : > { %835 = vpow2.f32 %v313_v2 }
  0xb6   : > { %v826_v46 = vpop.eup %825  ;;  %v315_v8 = vmul.f32 1.442695, %v293_v44  ;;  %v317_v47 = vmul.f32 1.442695, %v294_v45  ;;  %v525_v45 = vsel %vm238_vm0, %v489_v38, 0.0 }
  0xb7   : > { %v828_v48 = vpop.eup %827  ;;  %v1197_v9 = vpop.xlane.xlu0 %264  ;;  %v335_v49 = vsel %vm238_vm0, %v826_v46, 0.0 }
  0xb8   : > { %v1200_v50 = vpop.xlane.xlu1 %267  ;;  %837 = vpow2.f32 %v315_v8  ;;  %v295_v51 = vsub.f32 %v1069_v16, %v1197_v9  ;;  %336 = vadd.xlane.f32.xlu0 %v335_v49  ;;  %v341_v13 = vsel %vm238_vm0, %v828_v48, 0.0 }
  0xb9   : > { %v296_v12 = vsub.f32 %v1072_v17, %v1200_v50  ;;  %839 = vpow2.f32 %v317_v47 }
  0xba   : > { %v830_v52 = vpop.eup %829  ;;  %v319_v53 = vmul.f32 1.442695, %v295_v51 }
  0xbb   : > { %v321_v54 = vmul.f32 1.442695, %v296_v12  ;;  %v832_v55 = vpop.eup %831  ;;  %v338_v56 = vsel %vm238_vm0, %v830_v52, 0.0  ;;  %v1210_v58 = vpop.xlane.xlu0 %270 }
  0xbc   : > { %v1208_v57 = vpop.xlane.xlu1 %273  ;;  %841 = vpow2.f32 %v319_v53  ;;  %342 = vadd.xlane.f32.xlu0 %v341_v13  ;;  %339 = vadd.xlane.f32.xlu1 %v338_v56  ;;  %v297_v17 = vsub.f32 %v1082_v21, %v1210_v58  ;;  %v344_v59 = vsel %vm238_vm0, %v832_v55, 0.0  ;;  %v234_v55 = vld [vmem:[%s1109_s28 + $0x60] sm:$0xff] }
  0xbd   : > { %v298_v16 = vsub.f32 %v1079_v20, %v1208_v57  ;;  %843 = vpow2.f32 %v321_v54  ;;  %v490_v54 = vmul.f32 %v1160_v19, %v1079_v20  ;;  %v467_v56 = vsel %vm238_vm0, %v234_v55, 0.0  ;;  %v236_v20 = vld [vmem:[%s1109_s28 + $0x70] sm:$0xff] }
  0xbe   : > { %v834_v60 = vpop.eup %833  ;;  %v323_v62 = vmul.f32 1.442695, %v297_v17  ;;  %v491_v17 = vmul.f32 %v234_v55, %v1092_v25  ;;  %v473_v19 = vsel %vm238_vm0, %v236_v20, 0.0 }
  0xbf   : > { %v325_v61 = vmul.f32 1.442695, %v298_v16  ;;  %v836_v63 = vpop.eup %835  ;;  %v347_v3 = vsel %vm238_vm0, %v834_v60, 0.0  ;;  %v1220_v6 = vpop.xlane.xlu0 %276  ;;  %v528_v16 = vsel %vm238_vm0, %v490_v54, 0.0 }
  0xc0   : > { %v1218_v4 = vpop.xlane.xlu1 %279  ;;  %345 = vadd.xlane.f32.xlu1 %v344_v59  ;;  %348 = vadd.xlane.f32.xlu0 %v347_v3  ;;  %v299_v10 = vsub.f32 %v1092_v25, %v1220_v6  ;;  %v350_v14 = vsel %vm238_vm0, %v836_v63, 0.0  ;;  %v235_v59 = vld [vmem:[%s1109_s28 + $0x68] sm:$0xff]  ;;  %v493_v3 = vmul.f32 %v236_v20, %v1102_v29 }
  0xc1   : > { %845 = vpow2.f32 %v325_v61  ;;  %v300_v7 = vsub.f32 %v1089_v24, %v1218_v4  ;;  %v470_v60 = vsel %vm238_vm0, %v235_v59, 0.0  ;;  %v531_v61 = vsel %vm238_vm0, %v491_v17, 0.0 }
  0xc2   : > { %847 = vpow2.f32 %v323_v62  ;;  %v838_v15 = vpop.eup %837  ;;  %v327_v22 = vmul.f32 1.442695, %v299_v10  ;;  %v492_v62 = vmul.f32 %v235_v59, %v1089_v24  ;;  %v537_v10 = vsel %vm238_vm0, %v493_v3, 0.0 }
  0xc3   : > { %v329_v18 = vmul.f32 1.442695, %v300_v7  ;;  %v840_v23 = vpop.eup %839  ;;  %v353_v30 = vsel %vm238_vm0, %v838_v15, 0.0  ;;  %v1230_v32 = vpop.xlane.xlu0 %282  ;;  %v237_v7 = vld [vmem:[%s1109_s28 + $0x78] sm:$0xff] }
  0xc4   : > { %v1228_v31 = vpop.xlane.xlu1 %285  ;;  %351 = vadd.xlane.f32.xlu1 %v350_v14  ;;  %354 = vadd.xlane.f32.xlu0 %v353_v30  ;;  %v301_v36 = vsub.f32 %v1102_v29, %v1230_v32  ;;  %v356_v37 = vsel %vm238_vm0, %v840_v23, 0.0  ;;  %v534_v63 = vsel %vm238_vm0, %v492_v62, 0.0  ;;  %v476_v25 = vsel %vm238_vm0, %v237_v7, 0.0 }
  0xc5   : > { %849 = vpow2.f32 %v329_v18  ;;  %v302_v33 = vsub.f32 %v1099_v28, %v1228_v31  ;;  %v494_v14 = vmul.f32 %v237_v7, %v1099_v28 }
  0xc6   : > { %851 = vpow2.f32 %v327_v22  ;;  %v842_v39 = vpop.eup %841  ;;  %v331_v41 = vmul.f32 1.442695, %v301_v36 }
  0xc7   : > { %v333_v1 = vmul.f32 1.442695, %v302_v33  ;;  %v844_v42 = vpop.eup %843  ;;  %v359_v2 = vsel %vm238_vm0, %v842_v39, 0.0  ;;  %v540_v24 = vsel %vm238_vm0, %v494_v14, 0.0  ;;  %v1267_v15 = vpop.xlane.xlu0 %435 }
  0xc8   : > { %357 = vadd.xlane.f32.xlu1 %v356_v37  ;;  %360 = vadd.xlane.f32.xlu0 %v359_v2  ;;  %v362_v44 = vsel %vm238_vm0, %v844_v42, 0.0  ;;  %v433_v18 = vpop.xlane.xlu1 %432 }
  0xc9   : > { %853 = vpow2.f32 %v333_v1 }
  0xca   : > { %855 = vpow2.f32 %v331_v41 }
  0xcb   : > { %v846_v46 = vpop.eup %845  ;;  %v1269_v22 = vpop.xlane.xlu0 %438 }
  0xcc   : > { %v848_v8 = vpop.eup %847  ;;  %363 = vadd.xlane.f32.xlu1 %v362_v44  ;;  %526 = vadd.xlane.f32.xlu0 %v525_v45  ;;  %v368_v21 = vsel %vm238_vm0, %v846_v46, 0.0  ;;  %v1271_v29 = vpop.xlane.xlu1 %496 }
  0xcd   : > { %v365_v11 = vsel %vm238_vm0, %v848_v8, 0.0 }
  0xcf   : > { %v850_v47 = vpop.eup %849  ;;  %v1273_v23 = vpop.xlane.xlu0 %499 }
  0xd0   : > { %v852_v48 = vpop.eup %851  ;;  %369 = vadd.xlane.f32.xlu0 %v368_v21  ;;  %366 = vadd.xlane.f32.xlu1 %v365_v11  ;;  %v374_v49 = vsel %vm238_vm0, %v850_v47, 0.0  ;;  %v1275_v30 = vpop.xlane.xlu1 %502 }
  0xd1   : > { %v371_v51 = vsel %vm238_vm0, %v852_v48, 0.0  ;;  %v576_v48 = vlaneseq }
  0xd3   : > { %v854_v12 = vpop.eup %853  ;;  %v1277_v33 = vpop.xlane.xlu0 %441 }
  0xd4   : > { %v856_v13 = vpop.eup %855  ;;  %375 = vadd.xlane.f32.xlu0 %v374_v49  ;;  %372 = vadd.xlane.f32.xlu1 %v371_v51  ;;  %v380_v52 = vsel %vm238_vm0, %v854_v12, 0.0  ;;  %v1279_v36 = vpop.xlane.xlu1 %444  ;;  %v1310_v12 = vshrl.u32 %v576_v48, 7 }
  0xd5   : > { %v377_v53 = vsel %vm238_vm0, %v856_v13, 0.0  ;;  %v1314_v13 = vstv %s779_s29 }
  0xd6   : > { %v578_v54 = vadd.s32 8, %v1310_v12  ;;  %v580_v59 = vadd.s32 24, %v1310_v12  ;;  %v581_v20 = vadd.s32 32, %v1310_v12  ;;  %v582_v7 = vadd.s32 40, %v1310_v12 }
  0xd7   : > { %v1281_v28 = vpop.xlane.xlu0 %505  ;;  %v584_v48 = vadd.s32 56, %v1310_v12 }
  0xd8   : > { %381 = vadd.xlane.f32.xlu0 %v380_v52  ;;  %378 = vadd.xlane.f32.xlu1 %v377_v53  ;;  %v1283_v37 = vpop.xlane.xlu1 %508  ;;  %v595_v62 = vadd.s32 %v1314_v13, %v578_v54 }
  0xda   : > { %vm611_vm3 = vcmp.lt.s32.totalorder %v595_v62, 300 }
  0xdb   : > { %v1285_v38 = vpop.xlane.xlu0 %447 }
  0xdc   : > { %468 = vadd.xlane.f32.xlu1 %v467_v56  ;;  %529 = vadd.xlane.f32.xlu0 %v528_v16  ;;  %v1287_v39 = vpop.xlane.xlu1 %450  ;;  %v594_v56 = vadd.s32 %v1314_v13, %v1310_v12  ;;  %v579_v16 = vadd.s32 16, %v1310_v12 }
  0xde   : > { %vm610_vm2 = vcmp.lt.s32.totalorder %v594_v56, 300  ;;  %v596_v3 = vadd.s32 %v1314_v13, %v579_v16 }
  0xdf   : > { %v1289_v1 = vpop.xlane.xlu0 %511 }
  0xe0   : > { %471 = vadd.xlane.f32.xlu1 %v470_v60  ;;  %532 = vadd.xlane.f32.xlu0 %v531_v61  ;;  %v1291_v41 = vpop.xlane.xlu1 %514  ;;  %vm612_vm4 = vcmp.lt.s32.totalorder %v596_v3, 300 }
  0xe3   : > { %v1293_v42 = vpop.xlane.xlu0 %453 }
  0xe4   : > { %474 = vadd.xlane.f32.xlu1 %v473_v19  ;;  %535 = vadd.xlane.f32.xlu0 %v534_v63  ;;  %v1295_v2 = vpop.xlane.xlu1 %456 }
  0xe7   : > { %v1297_v44 = vpop.xlane.xlu0 %517 }
  0xe8   : > { %477 = vadd.xlane.f32.xlu1 %v476_v25  ;;  %538 = vadd.xlane.f32.xlu0 %v537_v10  ;;  %v1299_v45 = vpop.xlane.xlu1 %459  ;;  %v583_v25 = vadd.s32 48, %v1310_v12 }
  0xeb   : > { %v1301_v46 = vpop.xlane.xlu0 %520 }
  0xec   : > { %541 = vadd.xlane.f32.xlu1 %v540_v24  ;;  %v1303_v8 = vpop.xlane.xlu1 %462 }
  0xef   : > { %v1305_v21 = vpop.xlane.xlu0 %523 }
  0xf0   : > { %v1307_v11 = vpop.xlane.xlu1 %465 }
 0x145   : > { %v337_v47 = vpop.xlane.xlu0 %336 }
 0x146   : > { %857 = vlog2.f32 %v337_v47  ;;  %v597_v47 = vadd.s32 %v1314_v13, %v580_v59  ;;  %v1338_v59 = vadd.s32 %v1314_v13, %v583_v25 }
 0x148   : > { %vm613_vm5 = vcmp.lt.s32.totalorder %v597_v47, 300  ;;  %vm616_vm8 = vcmp.lt.s32.totalorder %v1338_v59, 300 }
 0x149   : > { %v340_v49 = vpop.xlane.xlu1 %339  ;;  %v343_v51 = vpop.xlane.xlu0 %342 }
 0x14a   : > { %859 = vlog2.f32 %v340_v49 }
 0x14b   : > { %861 = vlog2.f32 %v343_v51 }
 0x14d   : > { %v346_v52 = vpop.xlane.xlu1 %345  ;;  %v349_v53 = vpop.xlane.xlu0 %348 }
 0x14e   : > { %863 = vlog2.f32 %v346_v52  ;;  %v598_v52 = vadd.s32 %v1314_v13, %v581_v20 }
 0x14f   : > { %865 = vlog2.f32 %v349_v53 }
 0x150   : > { %v858_v55 = vpop.eup %857  ;;  %vm614_vm6 = vcmp.lt.s32.totalorder %v598_v52, 300 }
 0x151   : > { %v384_v17 = vmul.f32 0.6931472, %v858_v55  ;;  %v352_v60 = vpop.xlane.xlu1 %351  ;;  %v355_v61 = vpop.xlane.xlu0 %354  ;;  %v585_v55 = vadd.s32 64, %v1310_v12 }
 0x152   : > { %867 = vlog2.f32 %v352_v60 }
 0x153   : > { %v415_v19 = vadd.f32 %v384_v17, %v1165_v26  ;;  %869 = vlog2.f32 %v355_v61  ;;  %v1335_v17 = vadd.s32 %v1314_v13, %v582_v7 }
 0x154   : > { %v860_v63 = vpop.eup %859 }
 0x155   : > { %v862_v10 = vpop.eup %861  ;;  %v543_v14 = vmul.f32 %v433_v18, %v415_v19  ;;  %v386_v24 = vmul.f32 0.6931472, %v860_v63  ;;  %v358_v49 = vpop.xlane.xlu1 %357  ;;  %vm615_vm7 = vcmp.lt.s32.totalorder %v1335_v17, 300  ;;  %v587_v17 = vadd.s32 80, %v1310_v12 }
 0x156   : > { %v361_v51 = vpop.xlane.xlu0 %360  ;;  %v388_v26 = vmul.f32 0.6931472, %v862_v10  ;;  %871 = vlog2.f32 %v358_v49 }
 0x157   : > { %v559_v53 = vsub.f32 %v543_v14, %v1271_v29  ;;  %v416_v54 = vadd.f32 %v386_v24, %v1173_v34  ;;  %873 = vlog2.f32 %v361_v51  ;;  %v1342_v34 = vadd.s32 %v1314_v13, %v584_v48 }
 0x158   : > { %v864_v18 = vpop.eup %863  ;;  %v417_v16 = vadd.f32 %v388_v26, %v1167_v27 }
 0x159   : > { %v866_v60 = vpop.eup %865  ;;  %v544_v61 = vmul.f32 %v1267_v15, %v416_v54  ;;  %v390_v29 = vmul.f32 0.6931472, %v864_v18  ;;  %v364_v20 = vpop.xlane.xlu1 %363  ;;  %v626_v63 = vsel %vm610_vm2, %v559_v53, 0.0  ;;  %v1351_v15 = vadd.s32 %v1314_v13, %v585_v55 }
 0x15a   : > { %v1344_v19 = vpop.xlane.xlu0 %526  ;;  %v545_v27 = vmul.f32 %v1269_v22, %v417_v16  ;;  %v392_v7 = vmul.f32 0.6931472, %v866_v60  ;;  %875 = vlog2.f32 %v364_v20  ;;  %v643_v56 = vsel %vm642_vm1, %v626_v63, 0.0 }
 0x15b   : > { %v560_v25 = vsub.f32 %v544_v61, %v1273_v23  ;;  %v418_v10 = vadd.f32 %v390_v29, %v1175_v35  ;;  %vm617_vm9 = vcmp.lt.s32.totalorder %v1342_v34, 300  ;;  %vm618_vm10 = vcmp.lt.s32.totalorder %v1351_v15, 300 }
 0x15c   : > { %v868_v14 = vpop.eup %867  ;;  %v561_v24 = vsub.f32 %v545_v27, %v1275_v30  ;;  %v419_v48 = vadd.f32 %v392_v7, %v1181_v0  ;;  %v604_v34 = vadd.s32 %v1314_v13, %v587_v17 }
 0x15d   : > { %v870_v22 = vpop.eup %869  ;;  %v627_v23 = vsel %vm611_vm3, %v560_v25, 0.0  ;;  %v546_v35 = vmul.f32 %v1277_v33, %v418_v10  ;;  %v394_v49 = vmul.f32 0.6931472, %v868_v14  ;;  %v367_v51 = vpop.xlane.xlu1 %366  ;;  %v586_v33 = vadd.s32 72, %v1310_v12 }
 0x15e   : > { %v370_v26 = vpop.xlane.xlu0 %369  ;;  %v644_v53 = vsel %vm642_vm1, %v627_v23, 0.0  ;;  %v628_v30 = vsel %vm612_vm4, %v561_v24, 0.0  ;;  %v547_v0 = vmul.f32 %v1279_v36, %v419_v48  ;;  %v396_v54 = vmul.f32 0.6931472, %v870_v22 }
 0x15f   : > { %v645_v55 = vadd.f32 %v644_v53, %v643_v56  ;;  %v562_v18 = vsub.f32 %v546_v35, %v1281_v28  ;;  %v420_v62 = vadd.f32 %v394_v49, %v1183_v40  ;;  %v646_v60 = vsel %vm642_vm1, %v628_v30, 0.0 }
 0x160   : > { %v872_v16 = vpop.eup %871  ;;  %v563_v3 = vsub.f32 %v547_v0, %v1283_v37  ;;  %v421_v61 = vadd.f32 %v396_v54, %v1189_v43  ;;  %877 = vlog2.f32 %v367_v51  ;;  %v603_v47 = vadd.s32 %v1314_v13, %v586_v33 }
 0x161   : > { %v874_v36 = vpop.eup %873  ;;  %v647_v29 = vadd.f32 %v646_v60, %v645_v55  ;;  %v629_v20 = vsel %vm613_vm5, %v562_v18, 0.0  ;;  %v548_v28 = vmul.f32 %v1285_v38, %v420_v62  ;;  %v398_v63 = vmul.f32 0.6931472, %v872_v16  ;;  %v373_v40 = vpop.xlane.xlu1 %372 }
 0x162   : > { %v376_v27 = vpop.xlane.xlu0 %375  ;;  %v648_v7 = vsel %vm642_vm1, %v629_v20, 0.0  ;;  %v630_v25 = vsel %vm614_vm6, %v563_v3, 0.0  ;;  %v549_v10 = vmul.f32 %v1287_v39, %v421_v61  ;;  %v400_v14 = vmul.f32 0.6931472, %v874_v36 }
 0x163   : > { %v649_v37 = vadd.f32 %v648_v7, %v647_v29  ;;  %v564_v43 = vsub.f32 %v548_v28, %v1289_v1  ;;  %v422_v24 = vadd.f32 %v398_v63, %v1191_v5  ;;  %v650_v38 = vsel %vm642_vm1, %v630_v25, 0.0 }
 0x164   : > { %v876_v48 = vpop.eup %875  ;;  %v565_v22 = vsub.f32 %v549_v10, %v1291_v41  ;;  %v423_v56 = vadd.f32 %v400_v14, %v1197_v9  ;;  %879 = vlog2.f32 %v370_v26  ;;  %v588_v0 = vadd.s32 88, %v1310_v12 }
 0x165   : > { %v651_v52 = vadd.f32 %v650_v38, %v649_v37  ;;  %v631_v39 = vsel %vm615_vm7, %v564_v43, 0.0  ;;  %v550_v23 = vmul.f32 %v1293_v42, %v422_v24  ;;  %v402_v35 = vmul.f32 0.6931472, %v876_v48  ;;  %v379_v1 = vpop.xlane.xlu1 %378 }
 0x166   : > { %v382_v49 = vpop.xlane.xlu0 %381  ;;  %v652_v5 = vsel %vm642_vm1, %v631_v39, 0.0  ;;  %v632_v51 = vsel %vm616_vm8, %v565_v22, 0.0  ;;  %v551_v53 = vmul.f32 %v1295_v2, %v423_v56  ;;  %881 = vlog2.f32 %v373_v40 }
 0x167   : > { %v653_v41 = vadd.f32 %v652_v5, %v651_v52  ;;  %v566_v9 = vsub.f32 %v550_v23, %v1297_v44  ;;  %v424_v26 = vadd.f32 %v402_v35, %v1200_v50  ;;  %v654_v42 = vsel %vm642_vm1, %v632_v51, 0.0 }
 0x168   : > { %v567_v30 = vsub.f32 %v551_v53, %v1301_v46  ;;  %883 = vlog2.f32 %v376_v27  ;;  %vm619_vm11 = vcmp.lt.s32.totalorder %v603_v47, 300  ;;  %v605_v20 = vadd.s32 %v1314_v13, %v588_v0 }
 0x169   : > { %v655_v54 = vadd.f32 %v654_v42, %v653_v41  ;;  %v633_v59 = vsel %vm617_vm9, %v566_v9, 0.0  ;;  %v552_v2 = vmul.f32 %v1299_v45, %v424_v26  ;;  %885 = vlog2.f32 %v379_v1  ;;  %v469_v55 = vpop.xlane.xlu1 %468 }
 0x16a   : > { %v530_v44 = vpop.xlane.xlu0 %529  ;;  %v878_v18 = vpop.eup %877  ;;  %v656_v50 = vsel %vm642_vm1, %v633_v59, 0.0  ;;  %v634_v62 = vsel %vm618_vm10, %v567_v30, 0.0  ;;  %887 = vlog2.f32 %v382_v49  ;;  %v589_v28 = vadd.s32 96, %v1310_v12 }
 0x16b   : > { %v568_v46 = vsub.f32 %v552_v2, %v1305_v21  ;;  %v404_v33 = vmul.f32 0.6931472, %v878_v18  ;;  %v657_v16 = vadd.f32 %v656_v50, %v655_v54  ;;  %v658_v3 = vsel %vm642_vm1, %v634_v62, 0.0 }
 0x16c   : > { %vm620_vm12 = vcmp.lt.s32.totalorder %v604_v34, 300  ;;  %v591_v7 = vadd.s32 112, %v1310_v12  ;;  %vm621_vm13 = vcmp.lt.s32.totalorder %v605_v20, 300  ;;  %v592_v48 = vadd.s32 120, %v1310_v12 }
 0x16d   : > { %v425_v60 = vadd.f32 %v404_v33, %v1210_v58  ;;  %v635_v45 = vsel %vm619_vm11, %v568_v46, 0.0  ;;  %v472_v61 = vpop.xlane.xlu1 %471  ;;  %v659_v15 = vadd.f32 %v658_v3, %v657_v16  ;;  %v590_v58 = vadd.s32 104, %v1310_v12 }
 0x16e   : > { %v533_v36 = vpop.xlane.xlu0 %532  ;;  %v880_v29 = vpop.eup %879  ;;  %v660_v40 = vsel %vm642_vm1, %v635_v45, 0.0  ;;  %v608_v1 = vadd.s32 %v1314_v13, %v591_v7 }
 0x16f   : > { %v553_v63 = vmul.f32 %v1303_v8, %v425_v60  ;;  %v406_v21 = vmul.f32 0.6931472, %v880_v29  ;;  %v661_v47 = vadd.f32 %v660_v40, %v659_v15  ;;  %v606_v8 = vadd.s32 %v1314_v13, %v589_v28 }
 0x170   : > { %v882_v27 = vpop.eup %881  ;;  %v607_v35 = vadd.s32 %v1314_v13, %v590_v58  ;;  %vm624_vm0 = vcmp.lt.s32.totalorder %v608_v1, 300 }
 0x171   : > { %v569_v25 = vsub.f32 %v553_v63, %v1344_v19  ;;  %v408_v10 = vmul.f32 0.6931472, %v882_v27  ;;  %v426_v14 = vadd.f32 %v406_v21, %v1208_v57  ;;  %v475_v37 = vpop.xlane.xlu1 %474  ;;  %vm622_vm14 = vcmp.lt.s32.totalorder %v606_v8, 300 }
 0x172   : > { %v536_v43 = vpop.xlane.xlu0 %535  ;;  %v884_v24 = vpop.eup %883  ;;  %vm623_vm15 = vcmp.lt.s32.totalorder %v607_v35, 300 }
 0x173   : > { %v886_v38 = vpop.eup %885  ;;  %v410_v22 = vmul.f32 0.6931472, %v884_v24  ;;  %v427_v56 = vadd.f32 %v408_v10, %v1220_v6  ;;  %v554_v52 = vmul.f32 %v1307_v11, %v426_v14  ;;  %v636_v19 = vsel %vm620_vm12, %v569_v25, 0.0 }
 0x174   : > { %v888_v39 = vpop.eup %887  ;;  %v412_v23 = vmul.f32 0.6931472, %v886_v38  ;;  %v662_v57 = vsel %vm642_vm1, %v636_v19, 0.0  ;;  %v609_v11 = vadd.s32 %v1314_v13, %v592_v48 }
 0x175   : > { %v414_v49 = vmul.f32 0.6931472, %v888_v39  ;;  %v555_v5 = vmul.f32 %v469_v55, %v427_v56  ;;  %v663_v51 = vadd.f32 %v662_v57, %v661_v47  ;;  %v570_v12 = vsub.f32 %v554_v52, %v530_v44  ;;  %v478_v53 = vpop.xlane.xlu1 %477 }
 0x176   : > { %v428_v41 = vadd.f32 %v410_v22, %v1218_v4  ;;  %v429_v6 = vadd.f32 %v412_v23, %v1230_v32  ;;  %v539_v42 = vpop.xlane.xlu0 %538  ;;  %vm625_vm2 = vcmp.lt.s32.totalorder %v609_v11, 300 }
 0x177   : > { %v637_v9 = vsel %vm621_vm13, %v570_v12, 0.0  ;;  %v571_v26 = vsub.f32 %v555_v5, %v533_v36  ;;  %v430_v17 = vadd.f32 %v414_v49, %v1228_v31 }
 0x178   : > { %v664_v30 = vsel %vm642_vm1, %v637_v9, 0.0  ;;  %v556_v0 = vmul.f32 %v472_v61, %v428_v41  ;;  %v557_v54 = vmul.f32 %v475_v37, %v429_v6 }
 0x179   : > { %v665_v59 = vadd.f32 %v664_v30, %v663_v51  ;;  %v638_v2 = vsel %vm622_vm14, %v571_v26, 0.0  ;;  %v558_v55 = vmul.f32 %v478_v53, %v430_v17  ;;  %v542_v4 = vpop.xlane.xlu1 %541 }
 0x17a   : > { %v666_v32 = vsel %vm642_vm1, %v638_v2, 0.0  ;;  %v572_v44 = vsub.f32 %v556_v0, %v536_v43  ;;  %v573_v13 = vsub.f32 %v557_v54, %v539_v42 }
 0x17b   : > { %v667_v18 = vadd.f32 %v666_v32, %v665_v59  ;;  %v574_v50 = vsub.f32 %v558_v55, %v542_v4 }
 0x17c   : > { %v639_v62 = vsel %vm623_vm15, %v572_v44, 0.0  ;;  %v640_v31 = vsel %vm624_vm0, %v573_v13, 0.0 }
 0x17d   : > { %v668_v46 = vsel %vm642_vm1, %v639_v62, 0.0  ;;  %v670_v33 = vsel %vm642_vm1, %v640_v31, 0.0  ;;  %v641_v16 = vsel %vm625_vm2, %v574_v50, 0.0 }
 0x17e   : > { %v669_v34 = vadd.f32 %v668_v46, %v667_v18  ;;  %v672_v60 = vsel %vm642_vm1, %v641_v16, 0.0 }
 0x180   : > { %v671_v45 = vadd.f32 %v670_v33, %v669_v34 }
 0x182   : > { %v673_v3 = vadd.f32 %v672_v60, %v671_v45 }
 0x184   : > { %674 = vadd.xlane.f32.xlu0 %v673_v3 }
 0x211   : > { %v675_v61 = vpop.xlane.xlu0 %674 }
 0x212   : > { %v676_v36 = vrot.slane %v675_v61, 4 }
 0x214   : > { %v677_v29 = vadd.f32 %v676_v36, %v675_v61 }
 0x216   : > { %v678_v20 = vrot.slane %v677_v29, 2 }
 0x218   : > { %v679_v15 = vadd.f32 %v678_v20, %v677_v29 }
 0x21a   : > { %v680_v28 = vrot.slane %v679_v15, 1 }
 0x21c   : > { %v681_v63 = vadd.f32 %v680_v28, %v679_v15 }
 0x21e   : > { %784 = vpush %v681_v63 }
 0x24f   : > { %s785_s6 = spop %784 }
 0x250   : > { %v683_v21 = vstv %s785_s6 }
 0x251   : > { %684 = vst [vmem:[%s177_s4] sm:$0xff] %v683_v21 }
 0x252   : > { %902 = shalt.err (!%p899_p3)
}
 0x253   : > { %s903_s13 = scalar_lea.hbm %s1439_s14, 128  ;;  %s907_s26 = scalar_lea.hbm %s1481_s2, 384 }
 0x254   : > { %p904_p4 = scmp.ne.s32.totalorder %s1439_s14, %s903_s13  ;;  %p908_p9 = scmp.lt.u32.totalorder %s1439_s14, %s1481_s2 }
 0x255   : > { %p909_p10 = scmp.lt.u32.totalorder %s907_s26, %s903_s13  ;;  %p911_p12 = scmp.lt.u32.totalorder %s903_s13, %s1439_s14 }
 0x256   : > { %p905_p7 = pnand %p904_p4, %p1007_p5 }
 0x257   : > { %p910_p11 = por %p909_p10, %p908_p9 }
 0x258   : > { %p906_p8 = pneg %p905_p7 }
 0x259   : > { %p912_p13 = por %p911_p12, %p910_p11 }
 0x25b   : > { %p913_p0 = pnand %p912_p13, %p906_p8 }
 0x25d   : > { %916 = shalt.err (!%p913_p0)
}
 0x25e   : > { %786 = dma.vmem_to_hbm [thread:$0]  (%p1007_p5), %s1432_s5, 128, %s1439_s14, %s686_s16  }
 0x25f PF: > { %p792_p1 = scmp.ge.s32.totalorder %s951_s12, 2  ;;  %s711_s29 = sand.u32 1, %s939_s9  }
 0x260   : > { %s712_s30 = scalar_lea.sflag [#allocation3], %s711_s29 }
 0x261   : > { %p789_p2 = pnand %p792_p1, %p1011_p6 }
 0x263   : > { %934 = dma.done.wait (!%p789_p2), %s712_s30, 128  }
 0x264   : > { %936 = vsyncadd (!%p789_p2), %s712_s30, 4294967168  ;;  %p12_p3 = scmp.ge.s32.totalorder %s994_s15, 5   ;;  %s1484_s9 = smov %s943_s10 }
 0x265   : > { %s1485_s10 = smov %s947_s11  ;;  %s1486_s11 = smov %s1005_s18 }
 0x266   : > { %s1487_s12 = smov %s994_s15  ;;  %14 = sbr.rel (!%p12_p3) target bundleno = 3 (0x3), region = 66 }
 0x26d   :  { %717 = vsyncpa [#allocation3], 1 }
 0x26e   :  { %719 = vsyncpa [#allocation3 + $0x1], 1 }

</bundles_post_ra>
